<compile_context>
chip_gen: v6e
topology: v6e:2x2x1
jax: 0.10.0
libtpu: 0.0.40
codegen_flags: <defaults>
</compile_context>

<pallas_src>
import jax
import jax.numpy as jnp
from jax.experimental import pallas as pl
from jax.experimental.pallas import tpu as pltpu


# ----------------------------------------------------------------------------
# Parameter packing: one small (rows, cols) f32 slab holding w1|b1|w2|b2|w3^T|b3.
# ----------------------------------------------------------------------------
def pack_params(params):
    w1, b1 = params["w1"], params["b1"]    # (h1, f),  (h1, 1)
    w2, b2 = params["w2"], params["b2"]    # (h2, h1), (h2, 1)
    w3, b3 = params["w3"], params["b3"]    # (o,  h2), (o, 1)
    h1, f = w1.shape
    h2 = w2.shape[0]
    o = w3.shape[0]
    rows = max(h1, h2)
    cols = f + 1 + h1 + 1 + o + 1
    slab = jnp.zeros((rows, cols), jnp.float32)
    c = 0
    slab = slab.at[:h1, c:c + f].set(w1.astype(jnp.float32)); c += f
    slab = slab.at[:h1, c:c + 1].set(b1.astype(jnp.float32)); c += 1
    slab = slab.at[:h2, c:c + h1].set(w2.astype(jnp.float32)); c += h1
    slab = slab.at[:h2, c:c + 1].set(b2.astype(jnp.float32)); c += 1
    slab = slab.at[:h2, c:c + o].set(w3.T.astype(jnp.float32)); c += o
    slab = slab.at[:o, c:c + 1].set(b3.astype(jnp.float32)); c += 1
    return slab, (f, h1, h2, o)


# ----------------------------------------------------------------------------
# Kernel factory (dims and MXU/VPU choice are static / closed over).
# ----------------------------------------------------------------------------
def _make_kernel(f, h1, h2, o, use_mxu):
    def kernel(x_ref, p_ref, o_ref):
        x_t = x_ref[...]                   # (f, TILE_N): batch rides the lanes
        slab = p_ref[...]                  # resident packed weights, loaded once

        c = 0
        w1 = slab[:h1, c:c + f]; c += f
        b1 = slab[:h1, c:c + 1]; c += 1
        w2 = slab[:h2, c:c + h1]; c += h1
        b2 = slab[:h2, c:c + 1]; c += 1
        w3t = slab[:h2, c:c + o]; c += o   # (h2, o) == w3 transposed
        b3 = slab[:o, c:c + 1]; c += 1     # (o, 1)

        def dense(w, b, a):
            # w: (O, K), a: (K, TILE_N), b: (O, 1) -> (O, TILE_N)
            if use_mxu:
                acc = jnp.dot(w, a,
                              precision=jax.lax.Precision.HIGHEST,
                              preferred_element_type=jnp.float32)
            else:
                # VPU fallback: statically unrolled broadcast-MAC (K <= 8).
                # TODO(synk): inspect the bundle dump — if the w[:, k] lane
                # broadcasts land on VALU (not XLU vbcst) pre-materialize them.
                o_dim, k_dim = w.shape
                acc = jnp.zeros((o_dim, a.shape[-1]), jnp.float32)
                for k in range(k_dim):
                    acc = acc + w[:, k:k + 1] * a[k:k + 1, :]
            return acc + b                 # one lane-broadcast bias add per layer

        a1 = jnp.maximum(dense(w1, b1, x_t), 0.0)    # (h1, TILE_N)
        a2 = jnp.maximum(dense(w2, b2, a1), 0.0)     # (h2, TILE_N)

        # Output layer: o is tiny (1) -> VPU multiply + XLU sublane reduce.
        rows_out = []
        for j in range(o):
            yj = jnp.sum(w3t[:, j:j + 1] * a2, axis=0, keepdims=True)
            yj = yj + b3[j:j + 1, :]       # (1,1) lane-broadcast
            rows_out.append(yj)
        y = rows_out[0] if o == 1 else jnp.concatenate(rows_out, axis=0)
        o_ref[...] = y.astype(o_ref.dtype)

    return kernel


# ----------------------------------------------------------------------------
# Tile selection: lane-dense, not bigger than needed, >=2 grid steps for v7x.
# ----------------------------------------------------------------------------
def _pick_tile(n, tile_n):
    tile_n = max(128, 128 * pl.cdiv(int(tile_n), 128))
    lanes_needed = 128 * pl.cdiv(n, 128)
    tile_n = min(tile_n, lanes_needed)
    if lanes_needed >= 256:
        # Keep at least 2 well-balanced tiles so ("parallel",) can use both
        # v7x TensorCores; free on v5e/v6e.
        tile_n = min(tile_n, 128 * pl.cdiv(pl.cdiv(n, 2), 128))
    return max(tile_n, 128)


# ----------------------------------------------------------------------------
# Pallas entry point: x already transposed to (F, N). Returns (O, N).
# ----------------------------------------------------------------------------
def small_model_forward_t(x_t, params, *, tile_n=16384, use_mxu=True):
    f, n = x_t.shape
    slab, (f_p, h1, h2, o) = pack_params(params)
    assert f_p == f, (f_p, f)

    tile_n = _pick_tile(n, tile_n)
    grid = (pl.cdiv(n, tile_n),)
    kernel = _make_kernel(f, h1, h2, o, use_mxu)

    # Only needed if tiles are pushed very large (v7x: 64 MiB VMEM, 32 MiB
    # default scoped limit).  At the default 16K tile this stays None.
    vmem_limit = None
    if tile_n >= (1 << 18):
        vmem_limit = min(2 * (f + o) * 4 * tile_n + (4 << 20), 48 << 20)

    flops_per_elem = 2 * f * h1 + h1 + 2 * h1 * h2 + h2 + 2 * h2 * o + o
    y_t = pl.pallas_call(
        kernel,
        out_shape=jax.ShapeDtypeStruct((o, n), jnp.float32),
        grid=grid,
        in_specs=[
            pl.BlockSpec((f, tile_n), lambda i: (0, i)),   # pipelined batch tile
            pl.BlockSpec(slab.shape, lambda i: (0, 0)),    # resident weight slab
        ],
        out_specs=pl.BlockSpec((o, tile_n), lambda i: (0, i)),  # lane-dense out
        compiler_params=pltpu.CompilerParams(
            dimension_semantics=("parallel",),
            vmem_limit_bytes=vmem_limit,
        ),
        cost_estimate=pl.CostEstimate(
            flops=flops_per_elem * n,
            transcendentals=0,
            bytes_accessed=(f + o) * 4 * n,
        ),
    )(x_t.astype(jnp.float32), slab)
    return y_t


def _forward_jnp(x, p):
    """Fused plain-jnp forward for module-scale (tiny) batches."""
    h1 = jnp.maximum(x @ p["w1"].T + p["b1"].T, 0.0)
    h2 = jnp.maximum(h1 @ p["w2"].T + p["b2"].T, 0.0)
    return h2 @ p["w3"].T + p["b3"].T


def small_model_forward(x, params, *, tile_n=16384, use_mxu=True,
                        min_pallas_batch=2048):
    """x: (N, inputs) float32 -> (N, outputs) float32."""
    n = x.shape[0]
    if n < min_pallas_batch:
        # At the module's realistic batch (~8 rows) one fused jnp op beats any
        # kernel launch; per perf review this is strictly faster.
        return _forward_jnp(x.astype(jnp.float32), params)
    # Only a transpose remains in the wrapper (no zero-padded x copy).  Callers
    # that already hold x in (F, N) layout should use small_model_forward_t.
    return small_model_forward_t(x.T, params, tile_n=tile_n, use_mxu=use_mxu).T


# ----------------------------------------------------------------------------
# nn.Linear-style init (PyTorch layout W[out, in], biases as [out, 1] columns).
# ----------------------------------------------------------------------------
def init_params(key, inputs=5, h1=8, h2=8, outputs=1):
    ks = jax.random.split(key, 6)

    def linear(kw, kb, fan_in, fan_out):
        bound = 1.0 / jnp.sqrt(jnp.float32(fan_in))
        w = jax.random.uniform(kw, (fan_out, fan_in), jnp.float32, -bound, bound)
        b = jax.random.uniform(kb, (fan_out, 1), jnp.float32, -bound, bound)
        return w, b

    w1, b1 = linear(ks[0], ks[1], inputs, h1)
    w2, b2 = linear(ks[2], ks[3], h1, h2)
    w3, b3 = linear(ks[4], ks[5], h2, outputs)
    return {"w1": w1, "b1": b1, "w2": w2, "b2": b2, "w3": w3, "b3": b3}


def reference_forward(x, p):
    """Pure-JAX reference of the PyTorch forward."""
    return _forward_jnp(x.astype(jnp.float32), p)


if __name__ == "__main__":
    key = jax.random.PRNGKey(0)
    kp, k1, k2, k3 = jax.random.split(key, 4)

    in_features = 5
    params = init_params(kp, inputs=in_features, h1=8, h2=8, outputs=1)

    # Case 1: module-scale tiny batch -> fused jnp bypass (no Pallas dispatch).
    x_small = jax.random.normal(k1, (8, in_features), jnp.float32)
    y_small = jax.block_until_ready(small_model_forward(x_small, params))
    assert y_small.shape == (8, 1), y_small.shape
    assert jnp.allclose(y_small, reference_forward(x_small, params),
                        atol=1e-5, rtol=1e-5), "small-batch mismatch"

    # Case 2: Pallas VPU-MAC path, multi-tile grid with a ragged tail
    # (300 = 2*128 + 44) — exercises pad-free tail masking + resident weights.
    x_mid = jax.random.normal(k2, (300, in_features), jnp.float32)
    y_mid = jax.block_until_ready(
        small_model_forward(x_mid, params, tile_n=128, use_mxu=False,
                            min_pallas_batch=0))
    assert y_mid.shape == (300, 1), y_mid.shape
    assert jnp.allclose(y_mid, reference_forward(x_mid, params),
                        atol=1e-5, rtol=1e-5), "multi-tile VPU mismatch"

    # Case 3: Pallas MXU path via the batch-on-lanes entry point (no wrapper
    # transpose), tile clamped to 2048 -> 2 grid steps (v7x megacore split).
    # Tolerance is loose because f32 MXU matmuls may use reduced-precision
    # passes depending on how precision is honored by the backend.
    x_big = jax.random.normal(k3, (4096, in_features), jnp.float32)
    y_big_t = jax.block_until_ready(small_model_forward_t(x_big.T, params))
    assert y_big_t.shape == (1, 4096), y_big_t.shape
    assert jnp.allclose(y_big_t.T, reference_forward(x_big, params),
                        atol=1e-2, rtol=1e-2), "MXU-path mismatch"

    print("KERNEL_OK")
</pallas_src>

<mosaic_0001>
module attributes {stable_mosaic.version = 11 : i64} {
  func.func @kernel(%arg0: i32, %arg1: memref<5x128xf32, #tpu.memory_space<vmem>>, %arg2: memref<8x17xf32, #tpu.memory_space<vmem>>, %arg3: memref<1x128xf32, #tpu.memory_space<vmem>>) attributes {dimension_semantics = [#tpu.dimension_semantics<parallel>], iteration_bounds = array<i64: 3>, scalar_prefetch = 0 : i64, scratch_operands = 0 : i64, tpu.core_type = #tpu.core_type<tc>, window_params = [{transform_indices = @transform_0, window_bounds = array<i64: 5, 128>}, {pipeline_mode = #tpu.pipeline_mode<synchronous>, transform_indices = @transform_1, window_bounds = array<i64: 8, 17>}, {transform_indices = @transform_2, window_bounds = array<i64: 1, 128>}]} {
    %c0 = arith.constant 0 : index
    %c0_0 = arith.constant 0 : index
    %0 = vector.load %arg1[%c0, %c0_0] : memref<5x128xf32, #tpu.memory_space<vmem>>, vector<5x128xf32>
    %c0_1 = arith.constant 0 : index
    %c0_2 = arith.constant 0 : index
    %1 = vector.load %arg2[%c0_1, %c0_2] : memref<8x17xf32, #tpu.memory_space<vmem>>, vector<8x17xf32>
    %2 = vector.extract_strided_slice %1 {offsets = [0, 0], sizes = [8, 5], strides = [1, 1]} : vector<8x17xf32> to vector<8x5xf32>
    %3 = vector.extract_strided_slice %1 {offsets = [0, 5], sizes = [8, 1], strides = [1, 1]} : vector<8x17xf32> to vector<8x1xf32>
    %4 = vector.extract_strided_slice %1 {offsets = [0, 6], sizes = [8, 8], strides = [1, 1]} : vector<8x17xf32> to vector<8x8xf32>
    %5 = vector.extract_strided_slice %1 {offsets = [0, 14], sizes = [8, 1], strides = [1, 1]} : vector<8x17xf32> to vector<8x1xf32>
    %6 = vector.extract_strided_slice %1 {offsets = [0, 15], sizes = [8, 1], strides = [1, 1]} : vector<8x17xf32> to vector<8x1xf32>
    %7 = vector.extract_strided_slice %1 {offsets = [0, 16], sizes = [1, 1], strides = [1, 1]} : vector<8x17xf32> to vector<1x1xf32>
    %cst = arith.constant 0.000000e+00 : f32
    %8 = vector.broadcast %cst : f32 to vector<8x128xf32>
    %9 = vector.extract_strided_slice %2 {offsets = [0, 0], sizes = [8, 1], strides = [1, 1]} : vector<8x5xf32> to vector<8x1xf32>
    %10 = vector.extract_strided_slice %0 {offsets = [0, 0], sizes = [1, 128], strides = [1, 1]} : vector<5x128xf32> to vector<1x128xf32>
    %11 = vector.broadcast %9 : vector<8x1xf32> to vector<8x128xf32>
    %12 = vector.broadcast %10 : vector<1x128xf32> to vector<8x128xf32>
    %13 = arith.mulf %11, %12 : vector<8x128xf32>
    %14 = arith.addf %8, %13 : vector<8x128xf32>
    %15 = vector.extract_strided_slice %2 {offsets = [0, 1], sizes = [8, 1], strides = [1, 1]} : vector<8x5xf32> to vector<8x1xf32>
    %16 = vector.extract_strided_slice %0 {offsets = [1, 0], sizes = [1, 128], strides = [1, 1]} : vector<5x128xf32> to vector<1x128xf32>
    %17 = vector.broadcast %15 : vector<8x1xf32> to vector<8x128xf32>
    %18 = vector.broadcast %16 : vector<1x128xf32> to vector<8x128xf32>
    %19 = arith.mulf %17, %18 : vector<8x128xf32>
    %20 = arith.addf %14, %19 : vector<8x128xf32>
    %21 = vector.extract_strided_slice %2 {offsets = [0, 2], sizes = [8, 1], strides = [1, 1]} : vector<8x5xf32> to vector<8x1xf32>
    %22 = vector.extract_strided_slice %0 {offsets = [2, 0], sizes = [1, 128], strides = [1, 1]} : vector<5x128xf32> to vector<1x128xf32>
    %23 = vector.broadcast %21 : vector<8x1xf32> to vector<8x128xf32>
    %24 = vector.broadcast %22 : vector<1x128xf32> to vector<8x128xf32>
    %25 = arith.mulf %23, %24 : vector<8x128xf32>
    %26 = arith.addf %20, %25 : vector<8x128xf32>
    %27 = vector.extract_strided_slice %2 {offsets = [0, 3], sizes = [8, 1], strides = [1, 1]} : vector<8x5xf32> to vector<8x1xf32>
    %28 = vector.extract_strided_slice %0 {offsets = [3, 0], sizes = [1, 128], strides = [1, 1]} : vector<5x128xf32> to vector<1x128xf32>
    %29 = vector.broadcast %27 : vector<8x1xf32> to vector<8x128xf32>
    %30 = vector.broadcast %28 : vector<1x128xf32> to vector<8x128xf32>
    %31 = arith.mulf %29, %30 : vector<8x128xf32>
    %32 = arith.addf %26, %31 : vector<8x128xf32>
    %33 = vector.extract_strided_slice %2 {offsets = [0, 4], sizes = [8, 1], strides = [1, 1]} : vector<8x5xf32> to vector<8x1xf32>
    %34 = vector.extract_strided_slice %0 {offsets = [4, 0], sizes = [1, 128], strides = [1, 1]} : vector<5x128xf32> to vector<1x128xf32>
    %35 = vector.broadcast %33 : vector<8x1xf32> to vector<8x128xf32>
    %36 = vector.broadcast %34 : vector<1x128xf32> to vector<8x128xf32>
    %37 = arith.mulf %35, %36 : vector<8x128xf32>
    %38 = arith.addf %32, %37 : vector<8x128xf32>
    %39 = vector.broadcast %3 : vector<8x1xf32> to vector<8x128xf32>
    %40 = arith.addf %38, %39 : vector<8x128xf32>
    %cst_3 = arith.constant 0.000000e+00 : f32
    %41 = vector.broadcast %cst_3 : f32 to vector<8x128xf32>
    %42 = arith.maximumf %40, %41 : vector<8x128xf32>
    %cst_4 = arith.constant 0.000000e+00 : f32
    %43 = vector.broadcast %cst_4 : f32 to vector<8x128xf32>
    %44 = vector.extract_strided_slice %4 {offsets = [0, 0], sizes = [8, 1], strides = [1, 1]} : vector<8x8xf32> to vector<8x1xf32>
    %45 = vector.extract_strided_slice %42 {offsets = [0, 0], sizes = [1, 128], strides = [1, 1]} : vector<8x128xf32> to vector<1x128xf32>
    %46 = vector.broadcast %44 : vector<8x1xf32> to vector<8x128xf32>
    %47 = vector.broadcast %45 : vector<1x128xf32> to vector<8x128xf32>
    %48 = arith.mulf %46, %47 : vector<8x128xf32>
    %49 = arith.addf %43, %48 : vector<8x128xf32>
    %50 = vector.extract_strided_slice %4 {offsets = [0, 1], sizes = [8, 1], strides = [1, 1]} : vector<8x8xf32> to vector<8x1xf32>
    %51 = vector.extract_strided_slice %42 {offsets = [1, 0], sizes = [1, 128], strides = [1, 1]} : vector<8x128xf32> to vector<1x128xf32>
    %52 = vector.broadcast %50 : vector<8x1xf32> to vector<8x128xf32>
    %53 = vector.broadcast %51 : vector<1x128xf32> to vector<8x128xf32>
    %54 = arith.mulf %52, %53 : vector<8x128xf32>
    %55 = arith.addf %49, %54 : vector<8x128xf32>
    %56 = vector.extract_strided_slice %4 {offsets = [0, 2], sizes = [8, 1], strides = [1, 1]} : vector<8x8xf32> to vector<8x1xf32>
    %57 = vector.extract_strided_slice %42 {offsets = [2, 0], sizes = [1, 128], strides = [1, 1]} : vector<8x128xf32> to vector<1x128xf32>
    %58 = vector.broadcast %56 : vector<8x1xf32> to vector<8x128xf32>
    %59 = vector.broadcast %57 : vector<1x128xf32> to vector<8x128xf32>
    %60 = arith.mulf %58, %59 : vector<8x128xf32>
    %61 = arith.addf %55, %60 : vector<8x128xf32>
    %62 = vector.extract_strided_slice %4 {offsets = [0, 3], sizes = [8, 1], strides = [1, 1]} : vector<8x8xf32> to vector<8x1xf32>
    %63 = vector.extract_strided_slice %42 {offsets = [3, 0], sizes = [1, 128], strides = [1, 1]} : vector<8x128xf32> to vector<1x128xf32>
    %64 = vector.broadcast %62 : vector<8x1xf32> to vector<8x128xf32>
    %65 = vector.broadcast %63 : vector<1x128xf32> to vector<8x128xf32>
    %66 = arith.mulf %64, %65 : vector<8x128xf32>
    %67 = arith.addf %61, %66 : vector<8x128xf32>
    %68 = vector.extract_strided_slice %4 {offsets = [0, 4], sizes = [8, 1], strides = [1, 1]} : vector<8x8xf32> to vector<8x1xf32>
    %69 = vector.extract_strided_slice %42 {offsets = [4, 0], sizes = [1, 128], strides = [1, 1]} : vector<8x128xf32> to vector<1x128xf32>
    %70 = vector.broadcast %68 : vector<8x1xf32> to vector<8x128xf32>
    %71 = vector.broadcast %69 : vector<1x128xf32> to vector<8x128xf32>
    %72 = arith.mulf %70, %71 : vector<8x128xf32>
    %73 = arith.addf %67, %72 : vector<8x128xf32>
    %74 = vector.extract_strided_slice %4 {offsets = [0, 5], sizes = [8, 1], strides = [1, 1]} : vector<8x8xf32> to vector<8x1xf32>
    %75 = vector.extract_strided_slice %42 {offsets = [5, 0], sizes = [1, 128], strides = [1, 1]} : vector<8x128xf32> to vector<1x128xf32>
    %76 = vector.broadcast %74 : vector<8x1xf32> to vector<8x128xf32>
    %77 = vector.broadcast %75 : vector<1x128xf32> to vector<8x128xf32>
    %78 = arith.mulf %76, %77 : vector<8x128xf32>
    %79 = arith.addf %73, %78 : vector<8x128xf32>
    %80 = vector.extract_strided_slice %4 {offsets = [0, 6], sizes = [8, 1], strides = [1, 1]} : vector<8x8xf32> to vector<8x1xf32>
    %81 = vector.extract_strided_slice %42 {offsets = [6, 0], sizes = [1, 128], strides = [1, 1]} : vector<8x128xf32> to vector<1x128xf32>
    %82 = vector.broadcast %80 : vector<8x1xf32> to vector<8x128xf32>
    %83 = vector.broadcast %81 : vector<1x128xf32> to vector<8x128xf32>
    %84 = arith.mulf %82, %83 : vector<8x128xf32>
    %85 = arith.addf %79, %84 : vector<8x128xf32>
    %86 = vector.extract_strided_slice %4 {offsets = [0, 7], sizes = [8, 1], strides = [1, 1]} : vector<8x8xf32> to vector<8x1xf32>
    %87 = vector.extract_strided_slice %42 {offsets = [7, 0], sizes = [1, 128], strides = [1, 1]} : vector<8x128xf32> to vector<1x128xf32>
    %88 = vector.broadcast %86 : vector<8x1xf32> to vector<8x128xf32>
    %89 = vector.broadcast %87 : vector<1x128xf32> to vector<8x128xf32>
    %90 = arith.mulf %88, %89 : vector<8x128xf32>
    %91 = arith.addf %85, %90 : vector<8x128xf32>
    %92 = vector.broadcast %5 : vector<8x1xf32> to vector<8x128xf32>
    %93 = arith.addf %91, %92 : vector<8x128xf32>
    %cst_5 = arith.constant 0.000000e+00 : f32
    %94 = vector.broadcast %cst_5 : f32 to vector<8x128xf32>
    %95 = arith.maximumf %93, %94 : vector<8x128xf32>
    %96 = vector.broadcast %6 : vector<8x1xf32> to vector<8x128xf32>
    %97 = arith.mulf %96, %95 : vector<8x128xf32>
    %cst_6 = arith.constant dense<0.000000e+00> : vector<128xf32>
    %98 = vector.multi_reduction <add>, %97, %cst_6 [0] : vector<8x128xf32> to vector<128xf32>
    %99 = vector.shape_cast %98 : vector<128xf32> to vector<1x128xf32>
    %100 = vector.broadcast %7 : vector<1x1xf32> to vector<1x128xf32>
    %101 = arith.addf %99, %100 : vector<1x128xf32>
    %c0_7 = arith.constant 0 : index
    %c0_8 = arith.constant 0 : index
    %102 = vector.load %arg3[%c0_7, %c0_8] : memref<1x128xf32, #tpu.memory_space<vmem>>, vector<1x128xf32>
    tpu.vector_store %arg3[%c0_7, %c0_8], %101 {strides = array<i32>} : memref<1x128xf32, #tpu.memory_space<vmem>>, vector<1x128xf32>,
    return
  }
  func.func @transform_0(%arg0: i32) -> (i32, i32) {
    %c0_i32 = arith.constant 0 : i32
    %c0_i32_0 = arith.constant 0 : i32
    return %c0_i32, %arg0 : i32, i32
  }
  func.func @transform_1(%arg0: i32) -> (i32, i32) {
    %c0_i32 = arith.constant 0 : i32
    %c0_i32_0 = arith.constant 0 : i32
    %c0_i32_1 = arith.constant 0 : i32
    return %c0_i32, %c0_i32_0 : i32, i32
  }
  func.func @transform_2(%arg0: i32) -> (i32, i32) {
    %c0_i32 = arith.constant 0 : i32
    %c0_i32_0 = arith.constant 0 : i32
    return %c0_i32, %arg0 : i32, i32
  }
}

</mosaic_0001>

<bundles_post_ra>
// kernel: tpu_custom_call.1
= control target key start
LH: loop header
LB: loop body
LE: loop exit
PB: predicated region body
PF: predicated region fallthrough
CT: control target
= control target key end

     0   :  { %7 = vsyncpa [#allocation3], 0  ;;  %s853_s0 = inlined_call_operand.hbm [shape: f32[5,300], index: 0, kind: input, shape index: {}]   ;;  %s854_s1 = inlined_call_operand.hbm [shape: f32[8,17], index: 1, kind: input, shape index: {}]   ;;  %s855_s2 = inlined_call_operand.hbm [shape: f32[1,300], index: 2, kind: output, shape index: {}]  }
   0x1   :  { %9 = vsyncpa [#allocation3 + $0x1], 0 }
   0x2   :  { %10 = vsyncpa [#allocation6], 0 }
   0x3   :  { %11 = vsyncpa [#allocation4], 0 }
   0x4   :  { %13 = vsyncpa [#allocation4 + $0x1], 0  ;;  %s685_s9 = smov 0   ;;  %s687_s10 = smov 0  }
   0x5   :  { %s689_s11 = smov 0   ;;  %s691_s12 = smov 0  }
   0x6 LB: > { %s706_s13 = sadd.s32 4294967295, %s648_s12   ;;  %s422_s14 = sadd.s32 4294967294, %s648_s12   ;;  %s648_s12 = sphi %s691_s12, %s877_s12   ;;  %s644_s11 = sphi %s689_s11, %s876_s11   ;;  %s640_s10 = sphi %s687_s10, %s875_s10   ;;  %s636_s9 = sphi %s685_s9, %s874_s9  }
   0x7   : > { %p39_p0 = scmp.ne.s32.totalorder %s640_s10, %s636_s9  ;;  %p856_p1 = scmp.eq.s32.totalorder %s706_s13, 0 }
   0x8   : > { %p90_p3 = scmp.eq.s32.totalorder %s422_s14, 2  ;;  %p423_p5 = scmp.ge.s32.totalorder %s648_s12, 1 }
   0x9   : > { %p715_p4 = por %p856_p1, %p39_p0  ;;  %p97_p7 = scmp.lt.s32.totalorder %s648_s12, 4 }
   0xa   : > { %p720_p6 = por %p90_p3, %p39_p0  ;;  %s650_s18 = smov [#allocation5]  }
   0xb   : > { %s860_s15 = scalar_select %p715_p4, 1, 0 }
   0xc   : > { %s861_s16 = scalar_select %p720_p6, 1, 0 }
   0xd   : > { %p725_p8 = pnand %p423_p5, %p97_p7  ;;  %s110_s19 = sshll.u32 %s650_s18, 4  ;;  %s111_s19 = int_to_ptr.vmem [resolvable:$true] %s110_s19 }
   0xe   : > { %s732_s20 = sadd.s32 1, %s648_s12   ;;  %s26_s24 = sadd.s32 1, %s644_s11 }
   0xf   : > { %s862_s17 = scalar_select %p725_p8, 1, 0 }
  0x10   : > { %p442_p9 = pneg %p725_p8  ;;  %s23_s22 = ssub.s32 %s648_s12, %s732_s20 }
  0x11   : > { %p742_p11 = scmp.eq.s32.totalorder %s23_s22, 0  ;;  %p33_p12 = scmp.ne.s32.totalorder %s644_s11, %s640_s10 }
  0x12   : > { %p736_p10 = pnand %p442_p9, %p856_p1  ;;  %s537_s25 = scalar_lea.vmem %s111_s19, 128 }
  0x13   : > { %p538_p0 = scmp.ne.s32.totalorder %s111_s19, %s537_s25  ;;  %p545_p7 = scmp.lt.s32.totalorder %s111_s19, %s111_s19 }
  0x14   : > { %p528_p13 = pneg %p736_p10  ;;  %p546_p2 = scmp.lt.s32.totalorder %s537_s25, %s537_s25 }
  0x16   : > { %p540_p3 = pnand %p538_p0, %p528_p13  ;;  %p547_p9 = por %p546_p2, %p545_p7 }
  0x18   : > { %p541_p5 = pneg %p540_p3 }
  0x1a   : > { %p548_p1 = pnand %p547_p9, %p541_p5 }
  0x1c   : > { %551 = shalt.err (!%p548_p1)
}
  0x1d   : > { %445 = dma.hbm_to_vmem [thread:$0]  (!%p736_p10), %s854_s1, 128, %s111_s19, [#allocation6]  }
  0x1e   : > { %s759_s28 = scalar_select %p742_p11, %s644_s11, %s26_s24  }
  0x1f   : > { %p34_p1 = scmp.eq.s32.totalorder %s648_s12, 0  ;;  %p865_p2 = scmp.eq.s32.totalorder %s706_s13, 2 }
  0x20   : > { %p455_p0 = scmp.lt.s32.totalorder %s648_s12, 3  ;;  %s121_s30 = sand.u32 1, %s644_s11  }
  0x21   : > { %p767_p13 = por %p865_p2, %p33_p12  ;;  %p35_p3 = por %p34_p1, %p33_p12 }
  0x22   : > { %s426_s3 = sshll.u32 %s121_s30, 3  ;;  %s427_s4 = sshll.u32 %s648_s12, 7 }
  0x23   : > { %s866_s29 = scalar_select %p767_p13, 1, 0 }
  0x24   : > { %s780_s7 = scalar_lea.hbm %s853_s0, %s427_s4  ;;  %s125_s8 = scalar_lea.vmem [#allocation2], %s426_s3 }
  0x25   : > { %s132_s14 = sshll.u32 %s125_s8, 4  ;;  %p782_p10 = pnand %p455_p0, %p35_p3  ;;  %s133_s14 = int_to_ptr.vmem [resolvable:$true] %s132_s14 }
  0x26   : > { %s122_s19 = scalar_lea.sflag [#allocation3], %s121_s30  ;;  %s552_s21 = scalar_lea.hbm %s780_s7, 128 }
  0x27   : > { %p553_p11 = scmp.ne.s32.totalorder %s780_s7, %s552_s21  ;;  %p554_p12 = pneg %p782_p10 }
  0x28   : > { %s557_s24 = scalar_lea.hbm %s853_s0, 384  ;;  %p558_p9 = scmp.lt.s32.totalorder %s780_s7, %s853_s0 }
  0x29   : > { %p555_p5 = pnand %p554_p12, %p553_p11  ;;  %p559_p1 = scmp.lt.s32.totalorder %s557_s24, %s552_s21 }
  0x2b   : > { %p556_p7 = pneg %p555_p5  ;;  %p560_p2 = por %p559_p1, %p558_p9 }
  0x2d   : > { %p561_p0 = pnand %p560_p2, %p556_p7 }
  0x2f   : > { %564 = shalt.err (!%p561_p0)
}
  0x30   : > { %s565_s27 = scalar_lea.vmem %s133_s14, 128  ;;  %s651_s30 = smov [#allocation2]  }
  0x31   : > { %p566_p3 = scmp.ne.s32.totalorder %s133_s14, %s565_s27  ;;  %s570_s3 = sshll.u32 %s651_s30, 4  ;;  %s571_s3 = int_to_ptr.vmem [resolvable:$false] %s570_s3 }
  0x32   : > { %s572_s4 = scalar_lea.vmem %s571_s3, 256  ;;  %p573_p11 = scmp.lt.s32.totalorder %s133_s14, %s571_s3 }
  0x33   : > { %p568_p6 = pnand %p566_p3, %p554_p12  ;;  %p574_p5 = scmp.lt.s32.totalorder %s572_s4, %s565_s27 }
  0x35   : > { %p569_p13 = pneg %p568_p6  ;;  %p575_p4 = por %p574_p5, %p573_p11 }
  0x37   : > { %p576_p8 = pnand %p575_p4, %p569_p13 }
  0x39   : > { %579 = shalt.err (!%p576_p8)
}
  0x3a   : > { %449 = dma.hbm_to_vmem [thread:$0]  (!%p782_p10), %s780_s7, 128, %s133_s14, %s122_s19  }
  0x3b   : > { %p868_p7 = scmp.ne.s32.totalorder %s862_s17, 0 }
  0x3c   : > { %s803_s5 = sand.u32 (!%p868_p7), 1, %s640_s10   ;;  %p869_p6 = scmp.ne.s32.totalorder (!%p868_p7), %s860_s15, 0 }
  0x3d   : > { %141 = sbr.rel (%p868_p7) target bundleno = 273 (0x111), region = 28  ;;  %s429_s6 = sshll.u32 (!%p868_p7), %s803_s5, 3 }
  0x3e   : > { %s144_s8 = scalar_lea.sflag (!%p868_p7), [#allocation3], %s803_s5  ;;  %s807_s21 = scalar_lea.vmem (!%p868_p7), [#allocation2], %s429_s6 }
  0x42   : > { %623 = dma.done.wait (%p869_p6), %s144_s8, 128  }
  0x43   : > { %625 = vsyncadd (%p869_p6), %s144_s8, 4294967168  ;;  %p870_p4 = scmp.eq.s32.totalorder %s706_s13, 0 }
  0x45   : > { %627 = dma.done.wait (%p870_p4), [#allocation6], 128   ;;  %p871_p8 = pmov %p870_p4 }
  0x46   : > { %v652_v0 = vmov 2   ;;  %v653_v1 = vmov 0   ;;  %v172_v2 = vld [vmem:[#allocation5] sm:$0xff]  ;;  %v654_v3 = vmov 3   ;;  %v655_v4 = vmov 1   ;;  %s431_s15 = sshll.u32 %s706_s13, 4 }
  0x47   : > { %629 = vsyncadd (%p871_p8), [#allocation6], 4294967168  ;;  %510 = vset.pattern.permute.xlu1 %v652_v0  ;;  %508 = vset.pattern.permute.xlu0 %v653_v1  ;;  %v656_v5 = vmov 4   ;;  %v657_v6 = vmov 5   ;;  %v658_v7 = vmov 6   ;;  %v659_v8 = vmov 8   ;;  %s344_s19 = scalar_lea.hbm %s855_s2, %s431_s15 }
  0x48   : > { %195 = vperm.xlu1 %510, %v172_v2   ;;  %175 = vperm.xlu0 %508, %v172_v2   ;;  %v660_v9 = vmov 7   ;;  %v661_v10 = vmov 11   ;;  %v662_v11 = vmov 9   ;;  %v663_v12 = vmov 14   ;;  %v171_v22 = vld [vmem:[%s807_s21] sm:$0x1f] }
  0x49   : > { %v664_v13 = vmov 10   ;;  %v665_v14 = vmov 16   ;;  %v666_v15 = vmov 12   ;;  %v667_v16 = vmov 13   ;;  %s170_s17 = scalar_lea.vmem [#allocation7], %s803_s5  ;;  %s334_s22 = scalar_lea.sflag [#allocation4], %s803_s5 }
  0x4a   : > { %v668_v17 = vmov 15   ;;  %v178_v18 = vlaneseq  ;;  %s346_s7 = sshll.u32 %s170_s17, 4  ;;  %p872_p10 = scmp.ne.s32.totalorder %s866_s29, 0  ;;  %s347_s7 = int_to_ptr.vmem [resolvable:$true] %s346_s7 }
  0x4b   : > { %s580_s23 = scalar_lea.vmem %s347_s7, 16  ;;  %s669_s24 = smov [#allocation7]  }
  0x4c   : > { %511 = vset.pattern.permute.xlu1 %v654_v3  ;;  %509 = vset.pattern.permute.xlu0 %v655_v4  ;;  %v179_v19 = vshrl.u32 %v178_v18, 7  ;;  %p581_p13 = scmp.ne.s32.totalorder %s347_s7, %s580_s23  ;;  %s584_s25 = sshll.u32 %s669_s24, 4  ;;  %s585_s25 = int_to_ptr.vmem [resolvable:$false] %s584_s25 }
  0x4d   : > { %205 = vperm.xlu1 %511, %v172_v2   ;;  %185 = vperm.xlu0 %509, %v172_v2   ;;  %s586_s13 = scalar_lea.vmem %s585_s25, 32  ;;  %p587_p1 = scmp.lt.s32.totalorder %s347_s7, %s585_s25 }
  0x4e   : > { %v180_v20 = vsub.s32 0, %v179_v19  ;;  %v190_v21 = vsub.s32 1, %v179_v19  ;;  %v200_v23 = vsub.s32 2, %v179_v19  ;;  %v210_v27 = vsub.s32 3, %v179_v19  ;;  %p582_p12 = pnand %p581_p13, %p872_p10  ;;  %p588_p2 = scmp.lt.s32.totalorder %s586_s13, %s580_s23 }
  0x4f   : > { %v220_v29 = vsub.s32 4, %v179_v19  ;;  %v286_v60 = vsub.s32 5, %v179_v19  ;;  %v296_v4 = vsub.s32 6, %v179_v19 }
  0x50   : > { %v181_v26 = vrot.slane %v171_v22, %v180_v20  ;;  %v191_v28 = vrot.slane %v171_v22, %v190_v21  ;;  %v201_v30 = vrot.slane %v171_v22, %v200_v23  ;;  %v211_v34 = vrot.slane %v171_v22, %v210_v27  ;;  %p583_p9 = pneg %p582_p12  ;;  %p589_p0 = por %p588_p2, %p587_p1 }
  0x51   : > { %512 = vset.pattern.permute.xlu1 %v656_v5  ;;  %513 = vset.pattern.permute.xlu0 %v657_v6  ;;  %v221_v36 = vrot.slane %v171_v22, %v220_v29 }
  0x52   : > { %215 = vperm.xlu1 %512, %v172_v2   ;;  %225 = vperm.xlu0 %513, %v172_v2   ;;  %p590_p3 = pnand %p589_p0, %p583_p9 }
  0x56   : > { %514 = vset.pattern.permute.xlu1 %v658_v7  ;;  %516 = vset.pattern.permute.xlu0 %v659_v8 }
  0x57   : > { %231 = vperm.xlu1 %514, %v172_v2   ;;  %251 = vperm.xlu0 %516, %v172_v2  }
  0x5b   : > { %515 = vset.pattern.permute.xlu1 %v660_v9  ;;  %519 = vset.pattern.permute.xlu0 %v661_v10  ;;  %v306_v10 = vsub.s32 7, %v179_v19 }
  0x5c   : > { %241 = vperm.xlu1 %515, %v172_v2   ;;  %281 = vperm.xlu0 %519, %v172_v2  }
  0x60   : > { %517 = vset.pattern.permute.xlu1 %v662_v11  ;;  %522 = vset.pattern.permute.xlu0 %v663_v12 }
  0x61   : > { %261 = vperm.xlu1 %517, %v172_v2   ;;  %311 = vperm.xlu0 %522, %v172_v2  }
  0x65   : > { %518 = vset.pattern.permute.xlu1 %v664_v13  ;;  %525 = vset.pattern.permute.xlu0 %v665_v14 }
  0x66   : > { %271 = vperm.xlu1 %518, %v172_v2  }
  0x6a   : > { %520 = vset.pattern.permute.xlu1 %v666_v15 }
  0x6b   : > { %291 = vperm.xlu1 %520, %v172_v2  }
  0x6f   : > { %521 = vset.pattern.permute.xlu1 %v667_v16 }
  0x70   : > { %301 = vperm.xlu1 %521, %v172_v2  }
  0x74   : > { %523 = vset.pattern.permute.xlu1 %v668_v17 }
  0x75   : > { %317 = vperm.xlu1 %523, %v172_v2  }
  0x79   : > { %524 = vset.pattern.permute.xlu1 %v665_v14 }
  0x7a   : > { %328 = vperm.xlu1 %524, %v172_v2  }
  0xc3   : > { %v196_v24 = vpop.permute.xlu1 %195  ;;  %v176_v25 = vpop.permute.xlu0 %175 }
  0xc4   : > { %v182_v31 = vmul.f32 %v181_v26, %v176_v25  ;;  %v202_v37 = vmul.f32 %v201_v30, %v196_v24 }
  0xc8   : > { %v206_v32 = vpop.permute.xlu1 %205  ;;  %v186_v33 = vpop.permute.xlu0 %185 }
  0xc9   : > { %v192_v35 = vmul.f32 %v191_v28, %v186_v33  ;;  %v212_v39 = vmul.f32 %v211_v34, %v206_v32 }
  0xcb   : > { %v193_v38 = vadd.f32 %v192_v35, %v182_v31 }
  0xcd   : > { %v203_v40 = vadd.f32 %v202_v37, %v193_v38  ;;  %v216_v41 = vpop.permute.xlu1 %215  ;;  %v226_v45 = vpop.permute.xlu0 %225 }
  0xce   : > { %v222_v42 = vmul.f32 %v221_v36, %v216_v41 }
  0xcf   : > { %v213_v43 = vadd.f32 %v212_v39, %v203_v40 }
  0xd1   : > { %v223_v44 = vadd.f32 %v222_v42, %v213_v43 }
  0xd2   : > { %v232_v46 = vpop.permute.xlu1 %231  ;;  %v252_v55 = vpop.permute.xlu0 %251 }
  0xd3   : > { %v228_v47 = vadd.f32 %v226_v45, %v223_v44 }
  0xd5   : > { %v229_v48 = vmax.f32 %v228_v47, 0.0 }
  0xd7   : > { %v237_v49 = vrot.slane %v229_v48, %v180_v20  ;;  %v242_v50 = vpop.permute.xlu1 %241  ;;  %v247_v51 = vrot.slane %v229_v48, %v190_v21  ;;  %v257_v52 = vrot.slane %v229_v48, %v200_v23  ;;  %v267_v59 = vrot.slane %v229_v48, %v210_v27  ;;  %v282_v5 = vpop.permute.xlu0 %281 }
  0xd8   : > { %v277_v63 = vrot.slane %v229_v48, %v220_v29  ;;  %v287_v1 = vrot.slane %v229_v48, %v286_v60  ;;  %v297_v9 = vrot.slane %v229_v48, %v296_v4  ;;  %v307_v13 = vrot.slane %v229_v48, %v306_v10 }
  0xd9   : > { %v238_v53 = vmul.f32 %v237_v49, %v232_v46  ;;  %v248_v54 = vmul.f32 %v247_v51, %v242_v50  ;;  %v258_v57 = vmul.f32 %v257_v52, %v252_v55 }
  0xda   : > { %v288_v7 = vmul.f32 %v287_v1, %v282_v5 }
  0xdb   : > { %v249_v56 = vadd.f32 %v248_v54, %v238_v53 }
  0xdc   : > { %v262_v58 = vpop.permute.xlu1 %261  ;;  %v312_v17 = vpop.permute.xlu0 %311 }
  0xdd   : > { %v259_v61 = vadd.f32 %v258_v57, %v249_v56  ;;  %v268_v62 = vmul.f32 %v267_v59, %v262_v58 }
  0xdf   : > { %v269_v2 = vadd.f32 %v268_v62, %v259_v61 }
  0xe1   : > { %v272_v0 = vpop.permute.xlu1 %271 }
  0xe2   : > { %v278_v3 = vmul.f32 %v277_v63, %v272_v0 }
  0xe4   : > { %v279_v6 = vadd.f32 %v278_v3, %v269_v2 }
  0xe6   : > { %v292_v8 = vpop.permute.xlu1 %291  ;;  %v289_v11 = vadd.f32 %v288_v7, %v279_v6 }
  0xe7   : > { %v298_v12 = vmul.f32 %v297_v9, %v292_v8 }
  0xe9   : > { %v299_v15 = vadd.f32 %v298_v12, %v289_v11 }
  0xeb   : > { %v302_v14 = vpop.permute.xlu1 %301 }
  0xec   : > { %v308_v16 = vmul.f32 %v307_v13, %v302_v14 }
  0xee   : > { %v309_v18 = vadd.f32 %v308_v16, %v299_v15 }
  0xf0   : > { %v314_v20 = vadd.f32 %v312_v17, %v309_v18  ;;  %v318_v21 = vpop.permute.xlu1 %317 }
  0xf2   : > { %v315_v22 = vmax.f32 %v314_v20, 0.0 }
  0xf4   : > { %v320_v23 = vmul.f32 %v318_v21, %v315_v22 }
  0xf5   : > { %v329_v28 = vpop.permute.xlu1 %328 }
  0xf6   : > { %v321_v24 = vrot.slane %v320_v23, 4 }
  0xf8   : > { %v322_v25 = vadd.f32 %v321_v24, %v320_v23 }
  0xfa   : > { %v323_v26 = vrot.slane %v322_v25, 2 }
  0xfc   : > { %v324_v19 = vadd.f32 %v323_v26, %v322_v25 }
  0xfe   : > { %v325_v27 = vrot.slane %v324_v19, 1 }
 0x100   : > { %v326_v29 = vadd.f32 %v325_v27, %v324_v19 }
 0x102   : > { %v331_v30 = vadd.f32 %v329_v28, %v326_v29 }
 0x104   : > { %332 = vst [vmem:[%s170_s17] sm:$0x1] %v331_v30 }
 0x105   : > { %593 = shalt.err (!%p590_p3)
}
 0x106   : > { %s594_s26 = scalar_lea.hbm %s344_s19, 16  ;;  %s598_s3 = scalar_lea.hbm %s855_s2, 48 }
 0x107   : > { %p595_p11 = scmp.ne.s32.totalorder %s344_s19, %s594_s26  ;;  %p599_p6 = scmp.lt.s32.totalorder %s344_s19, %s855_s2 }
 0x108   : > { %p600_p4 = scmp.lt.s32.totalorder %s598_s3, %s594_s26 }
 0x109   : > { %p596_p5 = pnand %p595_p11, %p872_p10 }
 0x10a   : > { %p601_p8 = por %p600_p4, %p599_p6 }
 0x10b   : > { %p597_p7 = pneg %p596_p5 }
 0x10d   : > { %p602_p13 = pnand %p601_p8, %p597_p7 }
 0x10f   : > { %605 = shalt.err (!%p602_p13)
}
 0x110   : > { %440 = dma.vmem_to_hbm [thread:$0]  (%p872_p10), %s347_s7, 16, %s344_s19, %s334_s22  }
 0x111 PF: > { %p457_p12 = scmp.ge.s32.totalorder %s648_s12, 2  ;;  %s358_s6 = sand.u32 1, %s636_s9  }
 0x112   : > { %p873_p9 = scmp.ne.s32.totalorder %s861_s16, 0  ;;  %s359_s8 = scalar_lea.sflag [#allocation4], %s358_s6 }
 0x114   : > { %p451_p1 = pnand %p457_p12, %p873_p9 }
 0x116   : > { %p452_p2 = pneg %p451_p1 }
 0x118   : > { %631 = dma.done.wait (%p452_p2), %s359_s8, 16  }
 0x119   : > { %633 = vsyncadd (%p452_p2), %s359_s8, 4294967280  ;;  %p16_p0 = scmp.ge.s32.totalorder %s732_s20, 5   ;;  %s874_s9 = smov %s640_s10 }
 0x11a   : > { %s875_s10 = smov %s644_s11  ;;  %s876_s11 = smov %s759_s28 }
 0x11b   : > { %s877_s12 = smov %s732_s20  ;;  %18 = sbr.rel (!%p16_p0) target bundleno = 6 (0x6), region = 77 }
 0x120   :  { %363 = vsyncpa [#allocation3], 1 }
 0x121   :  { %365 = vsyncpa [#allocation3 + $0x1], 1 }
 0x122   :  { %366 = vsyncpa [#allocation6], 1 }
 0x123   :  { %367 = vsyncpa [#allocation4], 1 }
 0x124   :  { %369 = vsyncpa [#allocation4 + $0x1], 1 }

</bundles_post_ra>
